<compile_context>
chip_gen: v5e
topology: v5e:2x2
jax: 0.10.0
libtpu: 0.0.40
codegen_flags: <defaults>
</compile_context>

<pallas_src>
import math

import jax
import jax.numpy as jnp
import numpy as np
from jax.experimental import pallas as pl
from jax.experimental.pallas import tpu as pltpu


ROWS_PER_STEP = 8  # rows (tokens) handled per grid step; keeps the output tile sublane-aligned


# --------------------------------------------------------------------------- #
# Prep kernel: packed position indices pos[b, j] = cumsum_{i<=j}(seq!=0) * (seq!=0)
# --------------------------------------------------------------------------- #
def position_index_kernel(seq_ref, tri_ref, pos_ref):
    mask = (seq_ref[...] != 0).astype(jnp.float32)            # [B, S]
    # Inclusive cumsum along the sequence axis as a matmul with a constant
    # triangular matrix (hoisted to the wrapper).  f32 accumulation is exact
    # for S < 2**24, so the int32 cast below is exact.
    pos = jnp.dot(mask, tri_ref[...], preferred_element_type=jnp.float32) * mask
    pos_ref[...] = pos.astype(jnp.int32)


def compute_position_index(sequence):
    B, S = sequence.shape
    row = jax.lax.broadcasted_iota(jnp.int32, (S, S), 0)
    col = jax.lax.broadcasted_iota(jnp.int32, (S, S), 1)
    tri = (row <= col).astype(jnp.float32)                     # [S, S] constant input
    return pl.pallas_call(
        position_index_kernel,
        out_shape=jax.ShapeDtypeStruct((B, S), jnp.int32),
        in_specs=[
            pl.BlockSpec(memory_space=pltpu.MemorySpace.VMEM),
            pl.BlockSpec(memory_space=pltpu.MemorySpace.VMEM),
        ],
        out_specs=pl.BlockSpec(memory_space=pltpu.MemorySpace.VMEM),
    )(sequence, tri)


# --------------------------------------------------------------------------- #
# Main kernel: gathered token rows + VMEM-resident PE rows -> output tile
# --------------------------------------------------------------------------- #
def make_embedding_kernel(rows_per_step):
    def kernel(ids_ref, pos_ref, *refs):
        # refs = (tok_row_0, ..., tok_row_{R-1}, pe_ref, o_ref)
        tok_rows = refs[:rows_per_step]
        pe_ref = refs[rows_per_step]
        o_ref = refs[rows_per_step + 1]

        base = pl.program_id(0) * rows_per_step
        for g in range(rows_per_step):                        # static unroll
            p = pos_ref[base + g]                             # SMEM scalar position id
            o_ref[g:g + 1, :] = tok_rows[g][...] + pe_ref[pl.ds(p, 1), :]
        # TODO(synk): nn.Dropout(p=0.1) is identity in eval mode; training-mode
        # dropout (pltpu.prng_seed + prng_random_bits mask) is not implemented.

    return kernel


def bert_embedding(sequence, tok_table, pe_table):
    B, S = sequence.shape
    V, E = tok_table.shape
    P = pe_table.shape[0]
    assert P > S, "positional table must cover positions 0..S"

    sequence = sequence.astype(jnp.int32)
    pos = compute_position_index(sequence)                    # [B, S] int32 (Pallas)

    n_rows = B * S
    pad = (-n_rows) % ROWS_PER_STEP
    n_total = n_rows + pad

    # Clamp ids defensively: PyTorch's embedding would raise on an OOB id, while
    # an OOB block index here would be an OOB DMA.  Pad rows use (id=0, pos=0).
    ids_flat = jnp.clip(sequence.reshape(n_rows), 0, V - 1)
    pos_flat = pos.reshape(n_rows)
    if pad:
        zeros = jnp.zeros((pad,), jnp.int32)
        ids_flat = jnp.concatenate([ids_flat, zeros])
        pos_flat = jnp.concatenate([pos_flat, zeros])

    def tok_index_map(g):
        def index_map(i, ids, pos_idx):
            # block size along dim 0 is 1, so block index == table row index
            return (ids[i * ROWS_PER_STEP + g], 0)
        return index_map

    in_specs = [pl.BlockSpec((1, E), tok_index_map(g)) for g in range(ROWS_PER_STEP)]
    # Small PE table: keep the whole thing resident in VMEM (constant block index).
    in_specs.append(pl.BlockSpec((P, E), lambda i, ids, pos_idx: (0, 0)))

    grid_spec = pltpu.PrefetchScalarGridSpec(
        num_scalar_prefetch=2,
        grid=(n_total // ROWS_PER_STEP,),
        in_specs=in_specs,
        out_specs=pl.BlockSpec((ROWS_PER_STEP, E), lambda i, ids, pos_idx: (i, 0)),
    )

    out_flat = pl.pallas_call(
        make_embedding_kernel(ROWS_PER_STEP),
        out_shape=jax.ShapeDtypeStruct((n_total, E), tok_table.dtype),
        grid_spec=grid_spec,
        compiler_params=pltpu.CompilerParams(
            dimension_semantics=("parallel",),
        ),
    )(ids_flat, pos_flat, *([tok_table] * ROWS_PER_STEP), pe_table)

    return out_flat[:n_rows].reshape(B, S, E)


# --------------------------------------------------------------------------- #
# Fixed sinusoidal positional table (PositionalEmbedding)
# --------------------------------------------------------------------------- #
def make_sinusoidal_pe(max_len, d_model):
    pe = np.zeros((max_len, d_model), dtype=np.float32)
    position = np.arange(0, max_len, dtype=np.float32)[:, None]
    div_term = np.exp(
        np.arange(0, d_model, 2, dtype=np.float32) * -(math.log(10000.0) / d_model)
    )
    pe[:, 0::2] = np.sin(position * div_term)
    pe[:, 1::2] = np.cos(position * div_term)
    return jnp.asarray(pe)


if __name__ == "__main__":
    B, S = 2, 8
    VOCAB, EMBED = 64, 32
    MAX_LEN = 16  # positions lie in [0, S], so MAX_LEN > S suffices

    key = jax.random.PRNGKey(0)
    k_seq, k_tok = jax.random.split(key)

    # token ids in [1, VOCAB), then force some padding (id 0) at the tail
    sequence = jax.random.randint(k_seq, (B, S), 1, VOCAB, dtype=jnp.int32)
    sequence = sequence.at[0, 5:].set(0)
    sequence = sequence.at[1, 7:].set(0)

    # TokenEmbedding(vocab_size, embed_size, padding_idx=0): row 0 is zeros
    tok_table = jax.random.normal(k_tok, (VOCAB, EMBED), dtype=jnp.float32) * 0.02
    tok_table = tok_table.at[0].set(0.0)

    # PositionalEmbedding(d_model): fixed sinusoidal table indexed by packed position
    pe_table = make_sinusoidal_pe(MAX_LEN, EMBED)

    out = bert_embedding(sequence, tok_table, pe_table)
    jax.block_until_ready(out)

    # pure-JAX reference for the same forward pass (dropout is identity in eval)
    mask = (sequence != 0).astype(jnp.int32)
    pos_ref = jnp.cumsum(mask, axis=1) * mask
    ref = tok_table[sequence] + pe_table[pos_ref]

    assert out.shape == (B, S, EMBED)
    np.testing.assert_allclose(np.asarray(out), np.asarray(ref), rtol=1e-5, atol=1e-5)
    print("KERNEL_OK")
</pallas_src>

<mosaic_0001>
module attributes {stable_mosaic.version = 11 : i64} {
  func.func @position_index_kernel(%arg0: memref<2x8xi32, #tpu.memory_space<vmem>>, %arg1: memref<8x8xf32, #tpu.memory_space<vmem>>, %arg2: memref<2x8xi32, #tpu.memory_space<vmem>>) attributes {dimension_semantics = [], scalar_prefetch = 0 : i64, scratch_operands = 0 : i64, tpu.core_type = #tpu.core_type<tc>} {
    %c0 = arith.constant 0 : index
    %c0_0 = arith.constant 0 : index
    %0 = vector.load %arg0[%c0, %c0_0] : memref<2x8xi32, #tpu.memory_space<vmem>>, vector<2x8xi32>
    %c0_i32 = arith.constant 0 : i32
    %1 = vector.broadcast %c0_i32 : i32 to vector<2x8xi32>
    %2 = arith.cmpi ne, %0, %1 : vector<2x8xi32>
    %3 = arith.extui %2 : vector<2x8xi1> to vector<2x8xi32>
    %4 = arith.sitofp %3 : vector<2x8xi32> to vector<2x8xf32>
    %c0_1 = arith.constant 0 : index
    %c0_2 = arith.constant 0 : index
    %5 = vector.load %arg1[%c0_1, %c0_2] : memref<8x8xf32, #tpu.memory_space<vmem>>, vector<8x8xf32>
    %cst = arith.constant dense<0.000000e+00> : vector<2x8xf32>
    %6 = tpu.matmul %4, %5, %cst {dimension_numbers = #tpu.dot_dimension_numbers<[1], [0], [0], [1], [0, 0, 1, 1], [], []>} : vector<2x8xf32>, vector<8x8xf32>, vector<2x8xf32> -> vector<2x8xf32>
    %7 = arith.mulf %6, %4 : vector<2x8xf32>
    %8 = arith.fptosi %7 : vector<2x8xf32> to vector<2x8xi32>
    %c0_3 = arith.constant 0 : index
    %c0_4 = arith.constant 0 : index
    %9 = vector.load %arg2[%c0_3, %c0_4] : memref<2x8xi32, #tpu.memory_space<vmem>>, vector<2x8xi32>
    tpu.vector_store %arg2[%c0_3, %c0_4], %8 {strides = array<i32>} : memref<2x8xi32, #tpu.memory_space<vmem>>, vector<2x8xi32>,
    return
  }
}

</mosaic_0001>

<bundles_post_ra>
// kernel: tpu_custom_call.1
= control target key start
LH: loop header
LB: loop body
LE: loop exit
PB: predicated region body
PF: predicated region fallthrough
CT: control target
= control target key end

     0   :  { %7 = vsyncpa [#allocation3], 0  ;;  %s208_s0 = inlined_call_operand.hbm [shape: s32[2,8], index: 0, kind: input, shape index: {}]   ;;  %s209_s1 = inlined_call_operand.hbm [shape: f32[8,8], index: 1, kind: input, shape index: {}]   ;;  %s210_s2 = inlined_call_operand.hbm [shape: s32[2,8], index: 2, kind: output, shape index: {}]  }
   0x1   :  { %8 = vsyncpa [#allocation6], 0 }
   0x2   :  { %9 = vsyncpa [#allocation4], 0  ;;  %s15_s11 = sshll.u32 %s208_s0, 4  ;;  %s180_s12 = smov [#allocation2]   ;;  %s16_s11 = int_to_ptr.hbm [resolvable:$true] %s15_s11 }
   0x3   :  { %s17_s13 = sshll.u32 %s180_s12, 4  ;;  %s26_s16 = sshll.u32 %s209_s1, 4  ;;  %s18_s13 = int_to_ptr.vmem [resolvable:$true] %s17_s13  ;;  %s27_s16 = int_to_ptr.hbm [resolvable:$true] %s26_s16 }
   0x4   :  { %20 = dma.hbm_to_vmem [thread:$0]  %s16_s11, 32, %s18_s13, [#allocation3]  }
   0x5   :  { %s181_s17 = smov [#allocation5]  }
   0x6   :  { %s28_s18 = sshll.u32 %s181_s17, 4  ;;  %s29_s18 = int_to_ptr.vmem [resolvable:$true] %s28_s18 }
   0x7   :  { %31 = dma.hbm_to_vmem [thread:$0]  %s27_s16, 128, %s29_s18, [#allocation6]  }
   0x8   :  { %174 = dma.done.wait [#allocation3], 32  }
   0x9   :  { %175 = vsyncadd [#allocation3], 4294967264 }
   0xa   :  { %176 = dma.done.wait [#allocation6], 128  }
   0xb   :  { %177 = vsyncadd [#allocation6], 4294967168  ;;  %v44_v0 = vld [vmem:[#allocation5] sm:$0xff]  ;;  %v40_v1 = vld [vmem:[#allocation2] sm:$0x3]  ;;  %vm45_vm0 = vcmask 64512  }
   0xc   :  { %64 = vmatpush.msra.mxu0 %v44_v0  ;;  %vm41_vm1 = vcmp.ne.s32.totalorder %v40_v1, 0  ;;  %v182_v2 = vmov 0.0   ;;  %s183_s0 = smov [#allocation7]   ;;  %s80_s21 = sshll.u32 %s210_s2, 4  ;;  %vm71_vm3 = vcmask 58368   ;;  %s81_s21 = int_to_ptr.hbm [resolvable:$true] %s80_s21 }
   0xd   :  { %v91_v3 = vsel %vm41_vm1, 1.0, %v182_v2  ;;  %s78_s1 = sshll.u32 %s183_s0, 4  ;;  %s79_s1 = int_to_ptr.vmem [resolvable:$true] %s78_s1 }
   0xe   :  { %92 = vmatmul.msk.f32.vlgmr.msra.gmra.mxu0 %vm45_vm0, %v91_v3 }
  0x8b   :  { %v66_v4 = vpop.f32.mrf.mxu0 }
  0x8c   :  { %v69_v5 = vmul.f32 %v91_v3, %v66_v4 }
  0x8e   :  { %vm93_vm2 = vcmp.lt.s32.totalorder %v69_v5, 0  ;;  %v94_v6 = vceil.f32 %v69_v5  ;;  %v95_v7 = vfloor.f32 %v69_v5 }
  0x90   :  { %v96_v8 = vsel %vm93_vm2, %v94_v6, %v95_v7 }
  0x91   :  { %v97_v9 = vcvt.f32.s32 %v96_v8 }
  0x93   :  { %72 = vst.msk [vmem:[#allocation7] sm:$0x3] %vm71_vm3, %v97_v9 }
  0x94   :  { %83 = dma.vmem_to_hbm [thread:$0]  %s79_s1, 32, %s81_s21, [#allocation4]  }
  0x95   :  { %178 = dma.done.wait [#allocation4], 32  }
  0x96   :  { %179 = vsyncadd [#allocation4], 4294967264 }
  0x97   :  { %88 = vsyncpa [#allocation3], 1 }
  0x98   :  { %89 = vsyncpa [#allocation6], 1 }
  0x99   :  { %90 = vsyncpa [#allocation4], 1 }

</bundles_post_ra>
